<compile_context>
chip_gen: v7x
topology: tpu7x:2x2x1
jax: 0.10.0
libtpu: 0.0.40
codegen_flags: <defaults>
</compile_context>

<pallas_src>
import functools

import jax
import jax.numpy as jnp
import numpy as np
from jax import lax
from jax.experimental import pallas as pl
from jax.experimental.pallas import tpu as pltpu


def _round_up(x, m):
    return ((x + m - 1) // m) * m


def _pick_tile_h(H, W, Cin, Cout, K, p, budget_bytes=8 << 20):
    """Largest divisor of H whose per-step working set stays under a small VMEM budget
    (keeps double-buffered tiles well inside v7x's 64 MiB VMEM)."""
    Wp = W + 2 * p
    best = 1
    for th in range(1, H + 1):
        if H % th:
            continue
        L2 = _round_up(th * Wp, 128)
        L1 = _round_up(2 * p * Wp + 2 * p + L2, 128)
        Lm = _round_up(2 * p * Wp + 2 * p + L1, 128)
        est = 4 * (2 * (Cin * L1 + Lm)                      # double-buffered inputs
                   + 2 * (Cout + 1) * L2 + 4 * Cout         # double-buffered outputs
                   + (Cout + 3) * L2 + (Cin + 2) * L1)      # in-kernel temporaries
        if est <= budget_bytes:
            best = th
    return best


def _fused_partial_conv_kernel(m_ref, x_ref, w_ref, b_ref, cmask_ref,
                               z_ref, mout_ref, s1_ref, s2_ref,
                               *, K, d, p, Wp, L1, L2, mxu_dtype):
    """Fused: conv_M + zero-fixup + M*x + conv_I(+bias) + x/M + BN partial stats."""
    # ---- conv_M (all-ones KxK) over the p-halo'd tile grid (flat, row stride Wp) ----
    mslab = m_ref[0]                                    # (1, Lm)
    msum = jnp.zeros((1, L1), jnp.float32)
    for kh in range(K):
        for kw in range(K):
            s = kh * d * Wp + kw * d
            msum = msum + mslab[:, s:s + L1]
    m1 = jnp.where(msum == 0.0, 1.0, msum)              # M[index] = 1

    # ---- premultiply: P = m1 * x on the halo grid (x slab is zero in the pad ring) ----
    xs = x_ref[0]                                       # (Cin, L1)
    P = (m1 * xs).astype(mxu_dtype)

    # ---- conv_I: accumulate K*K shifted-slice MXU matmuls into an f32 accumulator ----
    acc = jnp.zeros((z_ref.shape[1], z_ref.shape[2]), jnp.float32)   # (Cout, L2)
    for kh in range(K):
        for kw in range(K):
            s = kh * d * Wp + kw * d
            acc = acc + jnp.dot(w_ref[kh * K + kw], P[:, s:s + L2],
                                preferred_element_type=jnp.float32)
    y = acc + b_ref[...]                                # bias (Cout, 1) broadcast

    # ---- x / M : one reciprocal per spatial position ----
    off = p * Wp + p
    inv_m = 1.0 / m1[:, off:off + L2]                   # (1, L2)
    z = y * inv_m

    z_ref[0] = z                                        # lane-dense (Cout, L2) store
    mout_ref[0] = msum[:, off:off + L2]                 # == M.masked_fill(index, 0)

    # ---- BatchNorm partial statistics (junk / padding lanes masked out) ----
    zm = z * cmask_ref[...]
    s1_ref[0] = jnp.sum(zm, axis=1, keepdims=True)      # (Cout, 1) sum
    s2_ref[0] = jnp.sum(zm * z, axis=1, keepdims=True)  # (Cout, 1) sum of squares


def _bn_relu_kernel(z_ref, a_ref, b_ref, o_ref):
    """Epilogue: out = relu(a * z + b), a/b folded BatchNorm affine."""
    o_ref[0] = jnp.maximum(z_ref[0] * a_ref[...] + b_ref[...], 0.0)


def partial_conv_block(x, M, w_I, b_I, gamma, beta, *, kernel_size, padding,
                       dilation=1, eps=1e-5, tile_h=None, mxu_dtype=jnp.float32):
    N, Cin, H, W = x.shape
    Cout = w_I.shape[0]
    K, d, p = kernel_size, dilation, padding
    # The module multiplies conv_M(M) with x elementwise -> requires "same" spatial size.
    assert d * (K - 1) == 2 * p, "PartialConvBlock requires output spatial == input spatial"
    Wp = W + 2 * p

    if tile_h is None:
        tile_h = _pick_tile_h(H, W, Cin, Cout, K, p)
    TH = int(tile_h)
    assert H % TH == 0, "tile_h must divide H"
    T = H // TH
    G = N * T

    # Flat slab lengths (lane axis), padded to multiples of 128 for lane-dense tiles.
    L2 = _round_up(TH * Wp, 128)                         # output slab per tile
    L1 = _round_up(2 * p * Wp + 2 * p + L2, 128)         # x / m1 halo slab
    Lm = _round_up(2 * p * Wp + 2 * p + L1, 128)         # mask slab

    f32 = jnp.float32
    x = x.astype(f32)
    M = M.astype(f32)

    # x slabs: p-padded image rows [h0-p, h0+TH+p), flattened row-major, stride Wp.
    x_pad = jnp.pad(x, ((0, 0), (0, 0), (p, p), (p, p)))             # (N,Cin,H+2p,Wp)
    x_tiles = jnp.stack([x_pad[:, :, t * TH: t * TH + TH + 2 * p, :] for t in range(T)],
                        axis=1)                                       # (N,T,Cin,TH+2p,Wp)
    x_flat = x_tiles.reshape(G, Cin, (TH + 2 * p) * Wp)
    x_flat = jnp.pad(x_flat, ((0, 0), (0, 0), (0, L1 - (TH + 2 * p) * Wp)))
    x_flat = x_flat.astype(mxu_dtype)

    # mask slabs: rows [h0-2p, h0+TH+2p), cols [-p, W+p), flat with a lead offset of p
    # so all tap-shift slices start at non-negative offsets.
    M_pad = jnp.pad(M, ((0, 0), (0, 0), (2 * p, 2 * p), (p, p)))      # (N,1,H+4p,Wp)
    m_tiles = jnp.stack([M_pad[:, :, t * TH: t * TH + TH + 4 * p, :] for t in range(T)],
                        axis=1)                                       # (N,T,1,TH+4p,Wp)
    m_flat = m_tiles.reshape(G, 1, (TH + 4 * p) * Wp)
    m_flat = jnp.pad(m_flat, ((0, 0), (0, 0), (p, Lm - p - (TH + 4 * p) * Wp)))

    # Weights per tap: (K*K, Cout, Cin); bias (Cout, 1).
    w_tap = w_I.astype(f32).transpose(2, 3, 0, 1).reshape(K * K, Cout, Cin).astype(mxu_dtype)
    bias = b_I.astype(f32).reshape(Cout, 1)

    # Lane-validity mask for the BN statistics (drops the pad columns / tail lanes).
    idx = np.arange(L2)
    cmask = jnp.asarray(((idx < TH * Wp) & (idx % Wp < W)).astype(np.float32)).reshape(1, L2)

    cparams = pltpu.CompilerParams(
        dimension_semantics=("parallel",),
        vmem_limit_bytes=32 * 1024 * 1024,
    )

    kern = functools.partial(_fused_partial_conv_kernel, K=K, d=d, p=p, Wp=Wp,
                             L1=L1, L2=L2, mxu_dtype=mxu_dtype)
    z, m_out_flat, ssum, ssq = pl.pallas_call(
        kern,
        grid=(G,),
        in_specs=[
            pl.BlockSpec((1, 1, Lm), lambda g: (g, 0, 0)),
            pl.BlockSpec((1, Cin, L1), lambda g: (g, 0, 0)),
            pl.BlockSpec((K * K, Cout, Cin), lambda g: (0, 0, 0)),
            pl.BlockSpec((Cout, 1), lambda g: (0, 0)),
            pl.BlockSpec((1, L2), lambda g: (0, 0)),
        ],
        out_specs=(
            pl.BlockSpec((1, Cout, L2), lambda g: (g, 0, 0)),
            pl.BlockSpec((1, 1, L2), lambda g: (g, 0, 0)),
            pl.BlockSpec((1, Cout, 1), lambda g: (g, 0, 0)),
            pl.BlockSpec((1, Cout, 1), lambda g: (g, 0, 0)),
        ),
        out_shape=(
            jax.ShapeDtypeStruct((G, Cout, L2), f32),
            jax.ShapeDtypeStruct((G, 1, L2), f32),
            jax.ShapeDtypeStruct((G, Cout, 1), f32),
            jax.ShapeDtypeStruct((G, Cout, 1), f32),
        ),
        compiler_params=cparams,
    )(m_flat, x_flat, w_tap, bias, cmask)

    # Global BatchNorm batch statistics (training mode: biased variance), folded affine.
    cnt = float(N * H * W)
    mean = jnp.sum(ssum, axis=0)[:, 0] / cnt                          # (Cout,)
    var = jnp.maximum(jnp.sum(ssq, axis=0)[:, 0] / cnt - mean * mean, 0.0)
    a = (gamma.astype(f32) * lax.rsqrt(var + eps))                    # (Cout,)
    bshift = beta.astype(f32) - a * mean
    a = a.reshape(Cout, 1)
    bshift = bshift.reshape(Cout, 1)

    out_flat = pl.pallas_call(
        _bn_relu_kernel,
        grid=(G,),
        in_specs=[
            pl.BlockSpec((1, Cout, L2), lambda g: (g, 0, 0)),
            pl.BlockSpec((Cout, 1), lambda g: (0, 0)),
            pl.BlockSpec((Cout, 1), lambda g: (0, 0)),
        ],
        out_specs=pl.BlockSpec((1, Cout, L2), lambda g: (g, 0, 0)),
        out_shape=jax.ShapeDtypeStruct((G, Cout, L2), f32),
        compiler_params=cparams,
    )(z, a, bshift)

    # Layout plumbing only: drop pad columns / tail lanes and restore NCHW.
    def unflatten(arr, C):
        v = arr[:, :, :TH * Wp].reshape(N, T, C, TH, Wp)[..., :W]
        return v.transpose(0, 2, 1, 3, 4).reshape(N, C, H, W)

    x_out = unflatten(out_flat, Cout)
    m_out = unflatten(m_out_flat, 1)
    return x_out, m_out


def _reference(x, M, w_I, b_I, gamma, beta, K, p, d, eps=1e-5):
    """Pure-JAX reference matching the PyTorch forward (training-mode BN)."""
    dn = ("NCHW", "OIHW", "NCHW")
    w_M = jnp.ones((1, 1, K, K), jnp.float32)
    msum = lax.conv_general_dilated(M, w_M, (1, 1), [(p, p), (p, p)],
                                    rhs_dilation=(d, d), dimension_numbers=dn)
    index = msum == 0.0
    m1 = jnp.where(index, 1.0, msum)
    y = lax.conv_general_dilated(m1 * x, w_I, (1, 1), [(p, p), (p, p)],
                                 rhs_dilation=(d, d), dimension_numbers=dn)
    y = y + b_I.reshape(1, -1, 1, 1)
    z = y / m1
    mean = jnp.mean(z, axis=(0, 2, 3), keepdims=True)
    var = jnp.mean((z - mean) ** 2, axis=(0, 2, 3), keepdims=True)
    out = gamma.reshape(1, -1, 1, 1) * (z - mean) * lax.rsqrt(var + eps) \
        + beta.reshape(1, -1, 1, 1)
    out = jnp.maximum(out, 0.0)
    m_out = jnp.where(index, 0.0, m1)
    return out, m_out


if __name__ == "__main__":
    key = jax.random.PRNGKey(0)
    k1, k2, k3, k4, k5, k6 = jax.random.split(key, 6)

    N, Cin, Cout, H, W = 2, 4, 8, 16, 16
    K, p, d = 3, 1, 1

    x = jax.random.normal(k1, (N, Cin, H, W), jnp.float32)
    M = (jax.random.uniform(k2, (N, 1, H, W)) > 0.3).astype(jnp.float32)
    M = M.at[:, :, 4:10, 4:10].set(0.0)   # force some all-zero windows (exercises index path)

    fan_in = Cin * K * K
    w_I = jax.random.normal(k3, (Cout, Cin, K, K), jnp.float32) / np.sqrt(fan_in)
    b_I = 0.1 * jax.random.normal(k4, (Cout,), jnp.float32)
    gamma = 1.0 + 0.1 * jax.random.normal(k5, (Cout,), jnp.float32)   # bn.weight
    beta = 0.1 * jax.random.normal(k6, (Cout,), jnp.float32)          # bn.bias

    x_ref_out, m_ref_out = _reference(x, M, w_I, b_I, gamma, beta, K, p, d)

    # Single row-tile per image (TH = H).
    x_out, m_out = partial_conv_block(x, M, w_I, b_I, gamma, beta,
                                      kernel_size=K, padding=p, dilation=d)
    jax.block_until_ready((x_out, m_out))
    np.testing.assert_allclose(np.asarray(x_out), np.asarray(x_ref_out), rtol=2e-3, atol=2e-3)
    np.testing.assert_allclose(np.asarray(m_out), np.asarray(m_ref_out), rtol=0, atol=0)

    # Multi-tile config: exercises halo'd row tiling + cross-tile BatchNorm statistics.
    x_out2, m_out2 = partial_conv_block(x, M, w_I, b_I, gamma, beta,
                                        kernel_size=K, padding=p, dilation=d, tile_h=8)
    jax.block_until_ready((x_out2, m_out2))
    np.testing.assert_allclose(np.asarray(x_out2), np.asarray(x_ref_out), rtol=2e-3, atol=2e-3)
    np.testing.assert_allclose(np.asarray(m_out2), np.asarray(m_ref_out), rtol=0, atol=0)

    print("KERNEL_OK")
</pallas_src>

<mosaic_0001>
module attributes {stable_mosaic.version = 11 : i64} {
  func.func @_fused_partial_conv_kernel(%arg0: i32, %arg1: memref<1x1x640xf32, #tpu.memory_space<vmem>>, %arg2: memref<1x4x512xf32, #tpu.memory_space<vmem>>, %arg3: memref<9x8x4xf32, #tpu.memory_space<vmem>>, %arg4: memref<8x1xf32, #tpu.memory_space<vmem>>, %arg5: memref<1x384xf32, #tpu.memory_space<vmem>>, %arg6: memref<1x8x384xf32, #tpu.memory_space<vmem>>, %arg7: memref<1x1x384xf32, #tpu.memory_space<vmem>>, %arg8: memref<1x8x1xf32, #tpu.memory_space<vmem>>, %arg9: memref<1x8x1xf32, #tpu.memory_space<vmem>>) attributes {dimension_semantics = [#tpu.dimension_semantics<parallel>], iteration_bounds = array<i64: 2>, scalar_prefetch = 0 : i64, scratch_operands = 0 : i64, tpu.core_type = #tpu.core_type<tc>, window_params = [{transform_indices = @transform_0, window_bounds = array<i64: 1, 1, 640>}, {transform_indices = @transform_1, window_bounds = array<i64: 1, 4, 512>}, {pipeline_mode = #tpu.pipeline_mode<synchronous>, transform_indices = @transform_2, window_bounds = array<i64: 9, 8, 4>}, {pipeline_mode = #tpu.pipeline_mode<synchronous>, transform_indices = @transform_3, window_bounds = array<i64: 8, 1>}, {pipeline_mode = #tpu.pipeline_mode<synchronous>, transform_indices = @transform_4, window_bounds = array<i64: 1, 384>}, {transform_indices = @transform_5, window_bounds = array<i64: 1, 8, 384>}, {transform_indices = @transform_6, window_bounds = array<i64: 1, 1, 384>}, {transform_indices = @transform_7, window_bounds = array<i64: 1, 8, 1>}, {transform_indices = @transform_8, window_bounds = array<i64: 1, 8, 1>}]} {
    %c0 = arith.constant 0 : index
    %c0_0 = arith.constant 0 : index
    %c0_1 = arith.constant 0 : index
    %0 = vector.load %arg1[%c0, %c0_0, %c0_1] : memref<1x1x640xf32, #tpu.memory_space<vmem>>, vector<1x1x640xf32>
    %1 = vector.shape_cast %0 : vector<1x1x640xf32> to vector<1x640xf32>
    %cst = arith.constant 0.000000e+00 : f32
    %2 = vector.broadcast %cst : f32 to vector<1x512xf32>
    %3 = vector.extract_strided_slice %1 {offsets = [0, 0], sizes = [1, 512], strides = [1, 1]} : vector<1x640xf32> to vector<1x512xf32>
    %4 = arith.addf %2, %3 : vector<1x512xf32>
    %5 = vector.extract_strided_slice %1 {offsets = [0, 1], sizes = [1, 512], strides = [1, 1]} : vector<1x640xf32> to vector<1x512xf32>
    %6 = arith.addf %4, %5 : vector<1x512xf32>
    %7 = vector.extract_strided_slice %1 {offsets = [0, 2], sizes = [1, 512], strides = [1, 1]} : vector<1x640xf32> to vector<1x512xf32>
    %8 = arith.addf %6, %7 : vector<1x512xf32>
    %9 = vector.extract_strided_slice %1 {offsets = [0, 18], sizes = [1, 512], strides = [1, 1]} : vector<1x640xf32> to vector<1x512xf32>
    %10 = arith.addf %8, %9 : vector<1x512xf32>
    %11 = vector.extract_strided_slice %1 {offsets = [0, 19], sizes = [1, 512], strides = [1, 1]} : vector<1x640xf32> to vector<1x512xf32>
    %12 = arith.addf %10, %11 : vector<1x512xf32>
    %13 = vector.extract_strided_slice %1 {offsets = [0, 20], sizes = [1, 512], strides = [1, 1]} : vector<1x640xf32> to vector<1x512xf32>
    %14 = arith.addf %12, %13 : vector<1x512xf32>
    %15 = vector.extract_strided_slice %1 {offsets = [0, 36], sizes = [1, 512], strides = [1, 1]} : vector<1x640xf32> to vector<1x512xf32>
    %16 = arith.addf %14, %15 : vector<1x512xf32>
    %17 = vector.extract_strided_slice %1 {offsets = [0, 37], sizes = [1, 512], strides = [1, 1]} : vector<1x640xf32> to vector<1x512xf32>
    %18 = arith.addf %16, %17 : vector<1x512xf32>
    %19 = vector.extract_strided_slice %1 {offsets = [0, 38], sizes = [1, 512], strides = [1, 1]} : vector<1x640xf32> to vector<1x512xf32>
    %20 = arith.addf %18, %19 : vector<1x512xf32>
    %cst_2 = arith.constant 0.000000e+00 : f32
    %21 = vector.broadcast %cst_2 : f32 to vector<1x512xf32>
    %22 = arith.cmpf oeq, %20, %21 : vector<1x512xf32>
    %cst_3 = arith.constant 1.000000e+00 : f32
    %23 = vector.broadcast %cst_3 : f32 to vector<1x512xf32>
    %24 = arith.select %22, %23, %20 : vector<1x512xi1>, vector<1x512xf32>
    %c0_4 = arith.constant 0 : index
    %c0_5 = arith.constant 0 : index
    %c0_6 = arith.constant 0 : index
    %25 = vector.load %arg2[%c0_4, %c0_5, %c0_6] : memref<1x4x512xf32, #tpu.memory_space<vmem>>, vector<1x4x512xf32>
    %26 = vector.shape_cast %25 : vector<1x4x512xf32> to vector<4x512xf32>
    %27 = vector.broadcast %24 : vector<1x512xf32> to vector<4x512xf32>
    %28 = arith.mulf %27, %26 : vector<4x512xf32>
    %cst_7 = arith.constant 0.000000e+00 : f32
    %29 = vector.broadcast %cst_7 : f32 to vector<8x384xf32>
    %c0_8 = arith.constant 0 : index
    %c0_9 = arith.constant 0 : index
    %c0_10 = arith.constant 0 : index
    %30 = vector.load %arg3[%c0_8, %c0_9, %c0_10] : memref<9x8x4xf32, #tpu.memory_space<vmem>>, vector<1x8x4xf32>
    %31 = vector.shape_cast %30 : vector<1x8x4xf32> to vector<8x4xf32>
    %32 = vector.extract_strided_slice %28 {offsets = [0, 0], sizes = [4, 384], strides = [1, 1]} : vector<4x512xf32> to vector<4x384xf32>
    %cst_11 = arith.constant dense<0.000000e+00> : vector<8x384xf32>
    %33 = tpu.matmul %31, %32, %cst_11 {dimension_numbers = #tpu.dot_dimension_numbers<[1], [0], [0], [1], [0, 0, 1, 1], [], []>} : vector<8x4xf32>, vector<4x384xf32>, vector<8x384xf32> -> vector<8x384xf32>
    %34 = arith.addf %29, %33 : vector<8x384xf32>
    %c1 = arith.constant 1 : index
    %c0_12 = arith.constant 0 : index
    %c0_13 = arith.constant 0 : index
    %35 = vector.load %arg3[%c1, %c0_12, %c0_13] : memref<9x8x4xf32, #tpu.memory_space<vmem>>, vector<1x8x4xf32>
    %36 = vector.shape_cast %35 : vector<1x8x4xf32> to vector<8x4xf32>
    %37 = vector.extract_strided_slice %28 {offsets = [0, 1], sizes = [4, 384], strides = [1, 1]} : vector<4x512xf32> to vector<4x384xf32>
    %cst_14 = arith.constant dense<0.000000e+00> : vector<8x384xf32>
    %38 = tpu.matmul %36, %37, %cst_14 {dimension_numbers = #tpu.dot_dimension_numbers<[1], [0], [0], [1], [0, 0, 1, 1], [], []>} : vector<8x4xf32>, vector<4x384xf32>, vector<8x384xf32> -> vector<8x384xf32>
    %39 = arith.addf %34, %38 : vector<8x384xf32>
    %c2 = arith.constant 2 : index
    %c0_15 = arith.constant 0 : index
    %c0_16 = arith.constant 0 : index
    %40 = vector.load %arg3[%c2, %c0_15, %c0_16] : memref<9x8x4xf32, #tpu.memory_space<vmem>>, vector<1x8x4xf32>
    %41 = vector.shape_cast %40 : vector<1x8x4xf32> to vector<8x4xf32>
    %42 = vector.extract_strided_slice %28 {offsets = [0, 2], sizes = [4, 384], strides = [1, 1]} : vector<4x512xf32> to vector<4x384xf32>
    %cst_17 = arith.constant dense<0.000000e+00> : vector<8x384xf32>
    %43 = tpu.matmul %41, %42, %cst_17 {dimension_numbers = #tpu.dot_dimension_numbers<[1], [0], [0], [1], [0, 0, 1, 1], [], []>} : vector<8x4xf32>, vector<4x384xf32>, vector<8x384xf32> -> vector<8x384xf32>
    %44 = arith.addf %39, %43 : vector<8x384xf32>
    %c3 = arith.constant 3 : index
    %c0_18 = arith.constant 0 : index
    %c0_19 = arith.constant 0 : index
    %45 = vector.load %arg3[%c3, %c0_18, %c0_19] : memref<9x8x4xf32, #tpu.memory_space<vmem>>, vector<1x8x4xf32>
    %46 = vector.shape_cast %45 : vector<1x8x4xf32> to vector<8x4xf32>
    %47 = vector.extract_strided_slice %28 {offsets = [0, 18], sizes = [4, 384], strides = [1, 1]} : vector<4x512xf32> to vector<4x384xf32>
    %cst_20 = arith.constant dense<0.000000e+00> : vector<8x384xf32>
    %48 = tpu.matmul %46, %47, %cst_20 {dimension_numbers = #tpu.dot_dimension_numbers<[1], [0], [0], [1], [0, 0, 1, 1], [], []>} : vector<8x4xf32>, vector<4x384xf32>, vector<8x384xf32> -> vector<8x384xf32>
    %49 = arith.addf %44, %48 : vector<8x384xf32>
    %c4 = arith.constant 4 : index
    %c0_21 = arith.constant 0 : index
    %c0_22 = arith.constant 0 : index
    %50 = vector.load %arg3[%c4, %c0_21, %c0_22] : memref<9x8x4xf32, #tpu.memory_space<vmem>>, vector<1x8x4xf32>
    %51 = vector.shape_cast %50 : vector<1x8x4xf32> to vector<8x4xf32>
    %52 = vector.extract_strided_slice %28 {offsets = [0, 19], sizes = [4, 384], strides = [1, 1]} : vector<4x512xf32> to vector<4x384xf32>
    %cst_23 = arith.constant dense<0.000000e+00> : vector<8x384xf32>
    %53 = tpu.matmul %51, %52, %cst_23 {dimension_numbers = #tpu.dot_dimension_numbers<[1], [0], [0], [1], [0, 0, 1, 1], [], []>} : vector<8x4xf32>, vector<4x384xf32>, vector<8x384xf32> -> vector<8x384xf32>
    %54 = arith.addf %49, %53 : vector<8x384xf32>
    %c5 = arith.constant 5 : index
    %c0_24 = arith.constant 0 : index
    %c0_25 = arith.constant 0 : index
    %55 = vector.load %arg3[%c5, %c0_24, %c0_25] : memref<9x8x4xf32, #tpu.memory_space<vmem>>, vector<1x8x4xf32>
    %56 = vector.shape_cast %55 : vector<1x8x4xf32> to vector<8x4xf32>
    %57 = vector.extract_strided_slice %28 {offsets = [0, 20], sizes = [4, 384], strides = [1, 1]} : vector<4x512xf32> to vector<4x384xf32>
    %cst_26 = arith.constant dense<0.000000e+00> : vector<8x384xf32>
    %58 = tpu.matmul %56, %57, %cst_26 {dimension_numbers = #tpu.dot_dimension_numbers<[1], [0], [0], [1], [0, 0, 1, 1], [], []>} : vector<8x4xf32>, vector<4x384xf32>, vector<8x384xf32> -> vector<8x384xf32>
    %59 = arith.addf %54, %58 : vector<8x384xf32>
    %c6 = arith.constant 6 : index
    %c0_27 = arith.constant 0 : index
    %c0_28 = arith.constant 0 : index
    %60 = vector.load %arg3[%c6, %c0_27, %c0_28] : memref<9x8x4xf32, #tpu.memory_space<vmem>>, vector<1x8x4xf32>
    %61 = vector.shape_cast %60 : vector<1x8x4xf32> to vector<8x4xf32>
    %62 = vector.extract_strided_slice %28 {offsets = [0, 36], sizes = [4, 384], strides = [1, 1]} : vector<4x512xf32> to vector<4x384xf32>
    %cst_29 = arith.constant dense<0.000000e+00> : vector<8x384xf32>
    %63 = tpu.matmul %61, %62, %cst_29 {dimension_numbers = #tpu.dot_dimension_numbers<[1], [0], [0], [1], [0, 0, 1, 1], [], []>} : vector<8x4xf32>, vector<4x384xf32>, vector<8x384xf32> -> vector<8x384xf32>
    %64 = arith.addf %59, %63 : vector<8x384xf32>
    %c7 = arith.constant 7 : index
    %c0_30 = arith.constant 0 : index
    %c0_31 = arith.constant 0 : index
    %65 = vector.load %arg3[%c7, %c0_30, %c0_31] : memref<9x8x4xf32, #tpu.memory_space<vmem>>, vector<1x8x4xf32>
    %66 = vector.shape_cast %65 : vector<1x8x4xf32> to vector<8x4xf32>
    %67 = vector.extract_strided_slice %28 {offsets = [0, 37], sizes = [4, 384], strides = [1, 1]} : vector<4x512xf32> to vector<4x384xf32>
    %cst_32 = arith.constant dense<0.000000e+00> : vector<8x384xf32>
    %68 = tpu.matmul %66, %67, %cst_32 {dimension_numbers = #tpu.dot_dimension_numbers<[1], [0], [0], [1], [0, 0, 1, 1], [], []>} : vector<8x4xf32>, vector<4x384xf32>, vector<8x384xf32> -> vector<8x384xf32>
    %69 = arith.addf %64, %68 : vector<8x384xf32>
    %c8 = arith.constant 8 : index
    %c0_33 = arith.constant 0 : index
    %c0_34 = arith.constant 0 : index
    %70 = vector.load %arg3[%c8, %c0_33, %c0_34] : memref<9x8x4xf32, #tpu.memory_space<vmem>>, vector<1x8x4xf32>
    %71 = vector.shape_cast %70 : vector<1x8x4xf32> to vector<8x4xf32>
    %72 = vector.extract_strided_slice %28 {offsets = [0, 38], sizes = [4, 384], strides = [1, 1]} : vector<4x512xf32> to vector<4x384xf32>
    %cst_35 = arith.constant dense<0.000000e+00> : vector<8x384xf32>
    %73 = tpu.matmul %71, %72, %cst_35 {dimension_numbers = #tpu.dot_dimension_numbers<[1], [0], [0], [1], [0, 0, 1, 1], [], []>} : vector<8x4xf32>, vector<4x384xf32>, vector<8x384xf32> -> vector<8x384xf32>
    %74 = arith.addf %69, %73 : vector<8x384xf32>
    %c0_36 = arith.constant 0 : index
    %c0_37 = arith.constant 0 : index
    %75 = vector.load %arg4[%c0_36, %c0_37] : memref<8x1xf32, #tpu.memory_space<vmem>>, vector<8x1xf32>
    %76 = vector.broadcast %75 : vector<8x1xf32> to vector<8x384xf32>
    %77 = arith.addf %74, %76 : vector<8x384xf32>
    %78 = vector.extract_strided_slice %24 {offsets = [0, 19], sizes = [1, 384], strides = [1, 1]} : vector<1x512xf32> to vector<1x384xf32>
    %cst_38 = arith.constant 1.000000e+00 : f32
    %79 = vector.broadcast %cst_38 : f32 to vector<1x384xf32>
    %80 = arith.divf %79, %78 : vector<1x384xf32>
    %81 = vector.broadcast %80 : vector<1x384xf32> to vector<8x384xf32>
    %82 = arith.mulf %77, %81 : vector<8x384xf32>
    %c0_39 = arith.constant 0 : index
    %c0_40 = arith.constant 0 : index
    %c0_41 = arith.constant 0 : index
    %83 = vector.load %arg6[%c0_39, %c0_40, %c0_41] : memref<1x8x384xf32, #tpu.memory_space<vmem>>, vector<1x8x384xf32>
    %84 = vector.shape_cast %83 : vector<1x8x384xf32> to vector<8x384xf32>
    %85 = vector.shape_cast %82 : vector<8x384xf32> to vector<1x8x384xf32>
    tpu.vector_store %arg6[%c0_39, %c0_40, %c0_41], %85 {strides = array<i32>} : memref<1x8x384xf32, #tpu.memory_space<vmem>>, vector<1x8x384xf32>,
    %86 = vector.extract_strided_slice %20 {offsets = [0, 19], sizes = [1, 384], strides = [1, 1]} : vector<1x512xf32> to vector<1x384xf32>
    %c0_42 = arith.constant 0 : index
    %c0_43 = arith.constant 0 : index
    %c0_44 = arith.constant 0 : index
    %87 = vector.load %arg7[%c0_42, %c0_43, %c0_44] : memref<1x1x384xf32, #tpu.memory_space<vmem>>, vector<1x1x384xf32>
    %88 = vector.shape_cast %87 : vector<1x1x384xf32> to vector<1x384xf32>
    %89 = vector.shape_cast %86 : vector<1x384xf32> to vector<1x1x384xf32>
    tpu.vector_store %arg7[%c0_42, %c0_43, %c0_44], %89 {strides = array<i32>} : memref<1x1x384xf32, #tpu.memory_space<vmem>>, vector<1x1x384xf32>,
    %c0_45 = arith.constant 0 : index
    %c0_46 = arith.constant 0 : index
    %90 = vector.load %arg5[%c0_45, %c0_46] : memref<1x384xf32, #tpu.memory_space<vmem>>, vector<1x384xf32>
    %91 = vector.broadcast %90 : vector<1x384xf32> to vector<8x384xf32>
    %92 = arith.mulf %82, %91 : vector<8x384xf32>
    %cst_47 = arith.constant dense<0.000000e+00> : vector<8xf32>
    %93 = vector.multi_reduction <add>, %92, %cst_47 [1] : vector<8x384xf32> to vector<8xf32>
    %94 = vector.shape_cast %93 : vector<8xf32> to vector<8x1xf32>
    %c0_48 = arith.constant 0 : index
    %c0_49 = arith.constant 0 : index
    %c0_50 = arith.constant 0 : index
    %95 = vector.load %arg8[%c0_48, %c0_49, %c0_50] : memref<1x8x1xf32, #tpu.memory_space<vmem>>, vector<1x8x1xf32>
    %96 = vector.shape_cast %95 : vector<1x8x1xf32> to vector<8x1xf32>
    %97 = vector.shape_cast %94 : vector<8x1xf32> to vector<1x8x1xf32>
    tpu.vector_store %arg8[%c0_48, %c0_49, %c0_50], %97 {strides = array<i32>} : memref<1x8x1xf32, #tpu.memory_space<vmem>>, vector<1x8x1xf32>,
    %98 = arith.mulf %92, %82 : vector<8x384xf32>
    %cst_51 = arith.constant dense<0.000000e+00> : vector<8xf32>
    %99 = vector.multi_reduction <add>, %98, %cst_51 [1] : vector<8x384xf32> to vector<8xf32>
    %100 = vector.shape_cast %99 : vector<8xf32> to vector<8x1xf32>
    %c0_52 = arith.constant 0 : index
    %c0_53 = arith.constant 0 : index
    %c0_54 = arith.constant 0 : index
    %101 = vector.load %arg9[%c0_52, %c0_53, %c0_54] : memref<1x8x1xf32, #tpu.memory_space<vmem>>, vector<1x8x1xf32>
    %102 = vector.shape_cast %101 : vector<1x8x1xf32> to vector<8x1xf32>
    %103 = vector.shape_cast %100 : vector<8x1xf32> to vector<1x8x1xf32>
    tpu.vector_store %arg9[%c0_52, %c0_53, %c0_54], %103 {strides = array<i32>} : memref<1x8x1xf32, #tpu.memory_space<vmem>>, vector<1x8x1xf32>,
    return
  }
  func.func @transform_0(%arg0: i32) -> (i32, i32, i32) {
    %c0_i32 = arith.constant 0 : i32
    %c0_i32_0 = arith.constant 0 : i32
    %c0_i32_1 = arith.constant 0 : i32
    return %arg0, %c0_i32, %c0_i32_0 : i32, i32, i32
  }
  func.func @transform_1(%arg0: i32) -> (i32, i32, i32) {
    %c0_i32 = arith.constant 0 : i32
    %c0_i32_0 = arith.constant 0 : i32
    %c0_i32_1 = arith.constant 0 : i32
    return %arg0, %c0_i32, %c0_i32_0 : i32, i32, i32
  }
  func.func @transform_2(%arg0: i32) -> (i32, i32, i32) {
    %c0_i32 = arith.constant 0 : i32
    %c0_i32_0 = arith.constant 0 : i32
    %c0_i32_1 = arith.constant 0 : i32
    %c0_i32_2 = arith.constant 0 : i32
    return %c0_i32, %c0_i32_0, %c0_i32_1 : i32, i32, i32
  }
  func.func @transform_3(%arg0: i32) -> (i32, i32) {
    %c0_i32 = arith.constant 0 : i32
    %c0_i32_0 = arith.constant 0 : i32
    %c0_i32_1 = arith.constant 0 : i32
    return %c0_i32, %c0_i32_0 : i32, i32
  }
  func.func @transform_4(%arg0: i32) -> (i32, i32) {
    %c0_i32 = arith.constant 0 : i32
    %c0_i32_0 = arith.constant 0 : i32
    %c0_i32_1 = arith.constant 0 : i32
    return %c0_i32, %c0_i32_0 : i32, i32
  }
  func.func @transform_5(%arg0: i32) -> (i32, i32, i32) {
    %c0_i32 = arith.constant 0 : i32
    %c0_i32_0 = arith.constant 0 : i32
    %c0_i32_1 = arith.constant 0 : i32
    return %arg0, %c0_i32, %c0_i32_0 : i32, i32, i32
  }
  func.func @transform_6(%arg0: i32) -> (i32, i32, i32) {
    %c0_i32 = arith.constant 0 : i32
    %c0_i32_0 = arith.constant 0 : i32
    %c0_i32_1 = arith.constant 0 : i32
    return %arg0, %c0_i32, %c0_i32_0 : i32, i32, i32
  }
  func.func @transform_7(%arg0: i32) -> (i32, i32, i32) {
    %c0_i32 = arith.constant 0 : i32
    %c0_i32_0 = arith.constant 0 : i32
    %c0_i32_1 = arith.constant 0 : i32
    return %arg0, %c0_i32, %c0_i32_0 : i32, i32, i32
  }
  func.func @transform_8(%arg0: i32) -> (i32, i32, i32) {
    %c0_i32 = arith.constant 0 : i32
    %c0_i32_0 = arith.constant 0 : i32
    %c0_i32_1 = arith.constant 0 : i32
    return %arg0, %c0_i32, %c0_i32_0 : i32, i32, i32
  }
}

</mosaic_0001>

<bundles_post_ra>
// kernel: tpu_custom_call.1
= control target key start
LH: loop header
LB: loop body
LE: loop exit
PB: predicated region body
PF: predicated region fallthrough
CT: control target
= control target key end

     0   :  { %s2989_s0 = inlined_call_operand.vmem [shape: f32[2,1,640], index: 0, kind: input, shape index: {}]   ;;  %s2990_s1 = inlined_call_operand.vmem [shape: f32[2,4,512], index: 1, kind: input, shape index: {}]   ;;  %s2991_s2 = inlined_call_operand.vmem [shape: f32[9,8,4], index: 2, kind: input, shape index: {}]   ;;  %s2992_s3 = inlined_call_operand.vmem [shape: f32[8,1], index: 3, kind: input, shape index: {}]   ;;  %s2993_s4 = inlined_call_operand.vmem [shape: f32[1,384], index: 4, kind: input, shape index: {}]   ;;  %s2994_s5 = inlined_call_operand.hbm [shape: f32[2,8,384], index: 5, kind: output, shape index: {0}]   ;;  %s2995_s6 = inlined_call_operand.hbm [shape: f32[2,1,384], index: 6, kind: output, shape index: {1}]   ;;  %s2996_s7 = inlined_call_operand.vmem [shape: f32[2,8,1], index: 7, kind: output, shape index: {2}]   ;;  %s2997_s8 = inlined_call_operand.vmem [shape: f32[2,8,1], index: 8, kind: output, shape index: {3}]  }
   0x1   :  { %2998 = sst [smem:[#allocation8_spill]] %s2989_s0 }
   0x2   :  { %2999 = sst [smem:[#allocation9_spill]] %s2990_s1 }
   0x3   :  { %14 = vsyncpa [#allocation3], 0 }
   0x4   :  { %16 = vsyncpa [#allocation3 + $0x1], 0 }
   0x5   :  { %17 = vsyncpa [#allocation5], 0 }
   0x6   :  { %19 = vsyncpa [#allocation5 + $0x1], 0  ;;  %s2584_s27 = smov 0   ;;  %s2586_s28 = smov 0  }
   0x7   :  { %s2588_s29 = smov 0   ;;  %s2590_s30 = smov 0  }
   0x8 LB: > { %s2605_s9 = sadd.s32 4294967295, %s2524_s30   ;;  %s2220_s10 = sadd.s32 4294967294, %s2524_s30   ;;  %s2524_s30 = sphi %s2590_s30, %s3007_s30   ;;  %s2520_s29 = sphi %s2588_s29, %s3006_s29   ;;  %s2516_s28 = sphi %s2586_s28, %s3005_s28   ;;  %s2512_s27 = sphi %s2584_s27, %s3004_s27  }
   0x9   : > { %s2609_s11 = sadd.s32 1, %s2524_s30   ;;  %s147_s12 = sadd.s32 1, %s2520_s29 }
   0xa   : > { %s144_s13 = ssub.s32 %s2524_s30, %s2609_s11  ;;  %p157_p0 = scmp.ne.s32.totalorder %s2520_s29, %s2516_s28 }
   0xb   : > { %p145_p1 = scmp.eq.s32.totalorder %s144_s13, 0  ;;  %p158_p2 = scmp.eq.s32.totalorder %s2605_s9, 1 }
   0xc   : > { %p163_p3 = scmp.ne.s32.totalorder %s2516_s28, %s2512_s27  ;;  %p164_p4 = scmp.eq.s32.totalorder %s2220_s10, 1 }
   0xd   : > { %s2620_s14 = scalar_select %p145_p1, %s2520_s29, %s147_s12  }
   0xe   : > { %p2622_p5 = por %p158_p2, %p157_p0  ;;  %p2626_p6 = por %p164_p4, %p163_p3 }
   0xf   : > { %p2223_p7 = scmp.ge.s32.totalorder %s2524_s30, 1  ;;  %p284_p8 = scmp.lt.s32.totalorder %s2524_s30, 3 }
  0x11   : > { %p285_p9 = pnand %p2223_p7, %p284_p8 }
  0x12   : > { %p335_p10 = scmp.lt.s32.totalorder (!%p285_p9), %s2605_s9, 1  ;;  %s3002_s0 = sld [smem:[#allocation8_spill]] (!%p285_p9)  ;;  %v2534_v1 = vmov (!%p285_p9), 0   ;;  %vm358_vm0 = vcmask (!%p285_p9), 1039360   ;;  %vm365_vm1 = vcmask (!%p285_p9), 1031168   ;;  %vm372_vm2 = vcmask (!%p285_p9), 900096  }
  0x13   : > { %288 = sbr.rel (%p285_p9) target bundleno = 745 (0x2e9), region = 40  ;;  %s2526_s22 = smov (!%p285_p9), 127   ;;  %2425 = vset.pattern.permute.xlu0 (!%p285_p9), %v2534_v1  ;;  %vm379_vm3 = vcmask (!%p285_p9), 891904   ;;  %vm386_vm4 = vcmask (!%p285_p9), 883712   ;;  %vm393_vm5 = vcmask (!%p285_p9), 752640   ;;  %v416_v23 = vlaneseq (!%p285_p9)  ;;  %v1928_v55 = vld [vmem:[%s2992_s3] sm:$0xff] (!%p285_p9) }
  0x14   : > { %s2527_s23 = smov (!%p285_p9), 110   ;;  %s2528_s24 = smov (!%p285_p9), 126   ;;  %vm400_vm6 = vcmask (!%p285_p9), 744448   ;;  %vm407_vm7 = vcmask (!%p285_p9), 736256   ;;  %v2535_v39 = vmov (!%p285_p9), 0.0   ;;  %vm2536_vm9 = vmmov (!%p285_p9), 0  }
  0x15   : > { %s2529_s25 = smov (!%p285_p9), 109   ;;  %s2530_s26 = smov (!%p285_p9), 108   ;;  %v2659_v31 = vshrl.u32 (!%p285_p9), %v416_v23, 7  ;;  %539 = vmatprep.mubr.f32.mxu0 (!%p285_p9), %v2535_v39  ;;  %2304 = vmatprep.subr.mxu1 (!%p285_p9), %v2535_v39  ;;  %vm468_vm10 = vcmask (!%p285_p9), 1043456   ;;  %v2228_v1 = vld [vmem:[%s2991_s2 + $0x8] sm:$0xff] (!%p285_p9)  ;;  %vm464_vm11 = vcmask (!%p285_p9), 31744  }
  0x16   : > { %s2531_s10 = smov (!%p285_p9), 92   ;;  %s2532_s12 = smov (!%p285_p9), 91   ;;  %2306 = vmatprep.mubr.msk.f32.mxu1 (!%p285_p9), %vm2536_vm9, %v2535_v39 }
  0x17   : > { %s2533_s13 = smov (!%p285_p9), 90   ;;  %s3003_s1 = sld [smem:[#allocation9_spill]] (!%p285_p9)  ;;  %v2664_v36 = vsub.s32 (!%p285_p9), 1, %v2659_v31  ;;  %v2667_v37 = vsub.s32 (!%p285_p9), 2, %v2659_v31  ;;  %v2674_v40 = vsub.s32 (!%p285_p9), 0, %v2659_v31  ;;  %v430_v50 = vsub.s32 (!%p285_p9), 3, %v2659_v31 }
  0x18   : > { %s2888_s20 = sand.u32 (!%p285_p9), 1, %s2516_s28  }
  0x19   : > { %s2022_s19 = scalar_lea.sflag (!%p285_p9), [#allocation3], %s2888_s20 }
  0x1a   : > { %s2634_s17 = scalar_select %p335_p10, %s2605_s9, 1 }
  0x1c   : > { %s2367_s18 = smul.u32 5, %s2634_s17 }
  0x1e   : > { %s338_s21 = scalar_lea.vmem %s3002_s0, %s2367_s18  ;;  %s2285_s18 = sshll.u32 %s2634_s17, 4 }
  0x1f   : > { %v352_v0 = vld [vmem:[%s338_s21] sm:$0x1f]  ;;  %s343_s21 = scalar_lea.vmem %s3003_s1, %s2285_s18 }
  0x20   : > { %355 = vrot.lane.b32.xlu0 %v352_v0, %s2526_s22  ;;  %369 = vrot.lane.b32.xlu1 %v352_v0, %s2527_s23  ;;  %v413_v34 = vld [vmem:[%s343_s21] sm:$0xff]  ;;  %v414_v45 = vld [vmem:[%s343_s21 + $0x8] sm:$0xff]  ;;  %s2365_s21 = smul.u32 24, %s2888_s20 }
  0x21   : > { %v438_v41 = vcombine.high %v413_v34, %v413_v34  ;;  %v439_v51 = vcombine.high %v414_v45, %v414_v45 }
  0x24   : > { %362 = vrot.lane.b32.xlu0 %v352_v0, %s2528_s24  ;;  %376 = vrot.lane.b32.xlu1 %v352_v0, %s2529_s25 }
  0x28   : > { %383 = vrot.lane.b32.xlu0 %v352_v0, %s2530_s26  ;;  %390 = vrot.lane.b32.xlu1 %v352_v0, %s2531_s10 }
  0x2c   : > { %397 = vrot.lane.b32.xlu0 %v352_v0, %s2532_s12  ;;  %404 = vrot.lane.b32.xlu1 %v352_v0, %s2533_s13 }
  0x92   : > { %v356_v2 = vpop.permute.xlu0 %355  ;;  %v370_v3 = vpop.permute.xlu1 %369 }
  0x93   : > { %v357_v4 = vrot.slane %v356_v2, 1  ;;  %v371_v8 = vrot.slane %v370_v3, 1 }
  0x95   : > { %v359_v5 = vsel %vm358_vm0, %v356_v2, %v357_v4  ;;  %v373_v16 = vsel %vm372_vm2, %v370_v3, %v371_v8  ;;  %v446_v8 = vld [vmem:[%s2991_s2] sm:$0xff] }
  0x96   : > { %v363_v6 = vpop.permute.xlu0 %362  ;;  %v377_v7 = vpop.permute.xlu1 %376  ;;  %v361_v10 = vadd.f32 %v359_v5, %v352_v0 }
  0x97   : > { %v364_v9 = vrot.slane %v363_v6, 1  ;;  %v378_v12 = vrot.slane %v377_v7, 1 }
  0x99   : > { %v366_v11 = vsel %vm365_vm1, %v363_v6, %v364_v9  ;;  %v380_v19 = vsel %vm379_vm3, %v377_v7, %v378_v12 }
  0x9a   : > { %v368_v13 = vadd.f32 %v366_v11, %v361_v10  ;;  %v384_v14 = vpop.permute.xlu0 %383  ;;  %v391_v15 = vpop.permute.xlu1 %390 }
  0x9b   : > { %v385_v17 = vrot.slane %v384_v14, 1  ;;  %v392_v20 = vrot.slane %v391_v15, 1 }
  0x9c   : > { %v375_v18 = vadd.f32 %v373_v16, %v368_v13 }
  0x9d   : > { %v387_v25 = vsel %vm386_vm4, %v384_v14, %v385_v17  ;;  %v394_v28 = vsel %vm393_vm5, %v391_v15, %v392_v20  ;;  %v2239_v15 = vld [vmem:[%s2991_s2 + $0x10] sm:$0xff] }
  0x9e   : > { %v382_v21 = vadd.f32 %v380_v19, %v375_v18  ;;  %v398_v22 = vpop.permute.xlu0 %397  ;;  %v405_v24 = vpop.permute.xlu1 %404 }
  0x9f   : > { %v399_v26 = vrot.slane %v398_v22, 1  ;;  %v406_v29 = vrot.slane %v405_v24, 1 }
  0xa0   : > { %v389_v27 = vadd.f32 %v387_v25, %v382_v21 }
  0xa1   : > { %v401_v32 = vsel %vm400_vm6, %v398_v22, %v399_v26  ;;  %v408_v35 = vsel %vm407_vm7, %v405_v24, %v406_v29  ;;  %v2245_v24 = vld [vmem:[%s2991_s2 + $0x18] sm:$0xff] }
  0xa2   : > { %v396_v30 = vadd.f32 %v394_v28, %v389_v27 }
  0xa4   : > { %v403_v33 = vadd.f32 %v401_v32, %v396_v30 }
  0xa6   : > { %v2669_v38 = vadd.f32 %v408_v35, %v403_v33  ;;  %v2251_v33 = vld [vmem:[%s2991_s2 + $0x20] sm:$0xff] }
  0xa8   : > { %vm411_vm8 = vcmp.eq.f32.partialorder %v2669_v38, 0.0 }
  0xa9   : > { %v412_v42 = vsel %vm411_vm8, 1.0, %v2669_v38 }
  0xaa   : > { %v423_v43 = vrot.slane %v412_v42, %v2664_v36  ;;  %v427_v44 = vrot.slane %v412_v42, %v2667_v37  ;;  %v419_v46 = vrot.slane %v412_v42, %v2674_v40  ;;  %v431_v52 = vrot.slane %v412_v42, %v430_v50 }
  0xab   : > { %2428 = vrcp.f32 %v412_v42 }
  0xac   : > { %v2681_v47 = vmul.f32 %v438_v41, %v423_v43  ;;  %v2683_v48 = vmul.f32 %v427_v44, %v414_v45  ;;  %v2689_v49 = vmul.f32 %v419_v46, %v413_v34  ;;  %v445_v53 = vmul.f32 %v439_v51, %v431_v52  ;;  %v2257_v46 = vld [vmem:[%s2991_s2 + $0x28] sm:$0xff] }
  0xae   : > { %457 = vrot.lane.b32.xlu1 %v2683_v48, %s2526_s22  ;;  %455 = vrot.lane.b32.xlu0 %v2681_v47, %s2526_s22 }
  0xb2   : > { %770 = vrot.lane.b32.xlu1 %v2681_v47, %s2528_s24  ;;  %453 = vrot.lane.b32.xlu0 %v2689_v49, %s2526_s22 }
  0xb5   : > { %v2429_v54 = vpop.eup %2428 }
  0xb6   : > { %768 = vrot.lane.b32.xlu1 %v2689_v49, %s2528_s24  ;;  %772 = vrot.lane.b32.xlu0 %v2683_v48, %s2528_s24  ;;  %v1943_v56 = vrot.slane %v2429_v54, %v2674_v40  ;;  %v1947_v57 = vrot.slane %v2429_v54, %v2664_v36  ;;  %v1951_v58 = vrot.slane %v2429_v54, %v2667_v37 }
  0xb7   : > { %v1955_v59 = vrot.slane %v2429_v54, %v430_v50  ;;  %v2263_v54 = vld [vmem:[%s2991_s2 + $0x30] sm:$0xff] }
  0xba   : > { %938 = vrot.lane.b32.xlu1 %v2683_v48, %s2527_s23  ;;  %936 = vrot.lane.b32.xlu0 %v2681_v47, %s2527_s23 }
  0xbe   : > { %1102 = vrot.lane.b32.xlu1 %v2681_v47, %s2529_s25  ;;  %934 = vrot.lane.b32.xlu0 %v2689_v49, %s2527_s23 }
  0xc2   : > { %1100 = vrot.lane.b32.xlu1 %v2689_v49, %s2529_s25  ;;  %1104 = vrot.lane.b32.xlu0 %v2683_v48, %s2529_s25 }
  0xc6   : > { %1268 = vrot.lane.b32.xlu1 %v2681_v47, %s2530_s26  ;;  %459 = vrot.lane.b32.xlu0 %v445_v53, %s2526_s22  ;;  %s2892_s22 = scalar_lea.vmem [#allocation2], %s2365_s21 }
  0xca   : > { %1266 = vrot.lane.b32.xlu1 %v2689_v49, %s2530_s26  ;;  %1270 = vrot.lane.b32.xlu0 %v2683_v48, %s2530_s26 }
  0xce   : > { %940 = vrot.lane.b32.xlu1 %v445_v53, %s2527_s23  ;;  %774 = vrot.lane.b32.xlu0 %v445_v53, %s2528_s24  ;;  %s2537_s23 = smov [#allocation2]  }
  0xcf   : > { %s2434_s24 = sshll.u32 %s2537_s23, 4  ;;  %s2435_s24 = int_to_ptr.vmem [resolvable:$false] %s2434_s24 }
  0xd0   : > { %s2436_s0 = scalar_lea.vmem %s2435_s24, 768 }
  0xd2   : > { %1436 = vrot.lane.b32.xlu1 %v2683_v48, %s2531_s10  ;;  %1434 = vrot.lane.b32.xlu0 %v2681_v47, %s2531_s10 }
  0xd6   : > { %1106 = vrot.lane.b32.xlu1 %v445_v53, %s2529_s25  ;;  %1432 = vrot.lane.b32.xlu0 %v2689_v49, %s2531_s10 }
  0xda   : > { %1600 = vrot.lane.b32.xlu1 %v2681_v47, %s2532_s12  ;;  %1272 = vrot.lane.b32.xlu0 %v445_v53, %s2530_s26  ;;  %s2368_s26 = smul.u32 384, %s2605_s9 }
  0xdc   : > { %s2912_s18 = scalar_lea.hbm %s2994_s5, %s2368_s26 }
  0xde   : > { %1598 = vrot.lane.b32.xlu1 %v2689_v49, %s2532_s12  ;;  %1602 = vrot.lane.b32.xlu0 %v2683_v48, %s2532_s12 }
  0xe2   : > { %1604 = vrot.lane.b32.xlu1 %v445_v53, %s2532_s12  ;;  %1438 = vrot.lane.b32.xlu0 %v445_v53, %s2531_s10  ;;  %s2049_s10 = sshll.u32 %s2892_s22, 4  ;;  %s2050_s10 = int_to_ptr.vmem [resolvable:$true] %s2049_s10 }
  0xe3   : > { %s2430_s21 = scalar_lea.vmem %s2050_s10, 384  ;;  %p2437_p0 = scmp.lt.s32.totalorder %s2050_s10, %s2435_s24 }
  0xe4   : > { %p2431_p11 = scmp.ne.s32.totalorder %s2050_s10, %s2430_s21  ;;  %p2438_p1 = scmp.lt.s32.totalorder %s2436_s0, %s2430_s21 }
  0xe6   : > { %1768 = vrot.lane.b32.xlu1 %v2683_v48, %s2533_s13  ;;  %1766 = vrot.lane.b32.xlu0 %v2681_v47, %s2533_s13  ;;  %p2432_p12 = pnand %p2431_p11, %p2622_p5  ;;  %p2439_p2 = por %p2438_p1, %p2437_p0 }
  0xe8   : > { %p2433_p13 = pneg %p2432_p12 }
  0xea   : > { %1770 = vrot.lane.b32.xlu1 %v445_v53, %s2533_s13  ;;  %1764 = vrot.lane.b32.xlu0 %v2689_v49, %s2533_s13  ;;  %p2440_p3 = pnand %p2439_p2, %p2433_p13 }
  0xee   : > { %1956 = vrot.lane.b32.xlu1 %v1943_v56, %s2529_s25  ;;  %1931 = vperm.xlu0 %2425, %v1928_v55  }
  0xf2   : > { %1958 = vrot.lane.b32.xlu1 %v1947_v57, %s2529_s25  ;;  %1960 = vrot.lane.b32.xlu0 %v1951_v58, %s2529_s25 }
  0xf6   : > { %1962 = vrot.lane.b32.xlu1 %v1955_v59, %s2529_s25 }
 0x120   : > { %v458_v60 = vpop.permute.xlu1 %457  ;;  %v456_v61 = vpop.permute.xlu0 %455 }
 0x121   : > { %v462_v62 = vsel %vm358_vm0, %v456_v61, %v458_v60 }
 0x122   : > { %2229 = vmatprep.subr.msk.mxu0 %vm468_vm10, %v462_v62 }
 0x124   : > { %v771_v63 = vpop.permute.xlu1 %770  ;;  %v454_v0 = vpop.permute.xlu0 %453 }
 0x125   : > { %v461_v2 = vsel %vm358_vm0, %v454_v0, %v456_v61  ;;  %v2275_v0 = vld [vmem:[%s2991_s2 + $0x40] sm:$0xff] }
 0x126   : > { %2230 = vmatpush1.msk.msra.mxu0 %vm468_vm10, %v461_v2 }
 0x127   : > { %2231 = vmatmul.mubr.msk.f32.vlgmr.msra.gmra.mrb[0].mxu0 %vm464_vm11, %v2228_v1  ;;  %2234 = vmatprep.subr.msk.mxu0 %vm468_vm10, %v2681_v47 }
 0x128   : > { %v769_v3 = vpop.permute.xlu1 %768  ;;  %2235 = vmatpush1.msk.msra.mxu0 %vm468_vm10, %v2689_v49  ;;  %v773_v4 = vpop.permute.xlu0 %772  ;;  %689 = vmatprep.mubr.f32.mxu0 %v2535_v39 }
 0x129   : > { %v777_v5 = vsel %vm365_vm1, %v771_v63, %v773_v4  ;;  %v776_v9 = vsel %vm365_vm1, %v769_v3, %v771_v63 }
 0x12a   : > { %2240 = vmatprep.subr.msk.mxu0 %vm468_vm10, %v777_v5 }
 0x12c   : > { %v939_v6 = vpop.permute.xlu1 %938  ;;  %v937_v7 = vpop.permute.xlu0 %936 }
 0x12d   : > { %v943_v10 = vsel %vm372_vm2, %v937_v7, %v939_v6 }
 0x12f   : > { %2236 = vmatmul.mubr.msk.f32.vlgmr.msra.gmra.mrb[0].mxu0 %vm464_vm11, %v446_v8 }
 0x130   : > { %2241 = vmatpush1.msk.msra.mxu0 %vm468_vm10, %v776_v9  ;;  %v1103_v11 = vpop.permute.xlu1 %1102  ;;  %v935_v12 = vpop.permute.xlu0 %934  ;;  %852 = vmatprep.mubr.f32.mxu0 %v2535_v39 }
 0x131   : > { %2246 = vmatprep.subr.msk.mxu0 %vm468_vm10, %v943_v10  ;;  %v942_v16 = vsel %vm372_vm2, %v935_v12, %v937_v7 }
 0x134   : > { %v1101_v13 = vpop.permute.xlu1 %1100  ;;  %v1105_v14 = vpop.permute.xlu0 %1104 }
 0x135   : > { %v1109_v17 = vsel %vm379_vm3, %v1103_v11, %v1105_v14  ;;  %v1108_v25 = vsel %vm379_vm3, %v1101_v13, %v1103_v11 }
 0x137   : > { %2242 = vmatmul.mubr.msk.f32.vlgmr.msra.gmra.mrb[0].mxu0 %vm464_vm11, %v2239_v15 }
 0x138   : > { %2247 = vmatpush1.msk.msra.mxu0 %vm468_vm10, %v942_v16  ;;  %v1269_v18 = vpop.permute.xlu1 %1268  ;;  %v460_v19 = vpop.permute.xlu0 %459  ;;  %1018 = vmatprep.mubr.f32.mxu0 %v2535_v39 }
 0x139   : > { %2252 = vmatprep.subr.msk.mxu0 %vm468_vm10, %v1109_v17  ;;  %v463_v20 = vsel %vm358_vm0, %v458_v60, %v460_v19  ;;  %v2269_v60 = vld [vmem:[%s2991_s2 + $0x38] sm:$0xff] }
 0x13a   : > { %2305 = vmatpush3.msk.msra.mxu1 %vm468_vm10, %v463_v20 }
 0x13b   : > { %2309 = vmatprep.subr.mxu1 %v2535_v39  ;;  %2307 = vmatmul.mubr.msk.f32.vlgmr.msra.gmra.mrb[0].mxu1 %vm464_vm11, %v2228_v1 }
 0x13c   : > { %v1267_v21 = vpop.permute.xlu1 %1266  ;;  %2310 = vmatpush3.msk.msra.mxu1 %vm468_vm10, %v2683_v48  ;;  %v1271_v22 = vpop.permute.xlu0 %1270  ;;  %2311 = vmatprep.mubr.msk.f32.mxu1 %vm2536_vm9, %v2535_v39 }
 0x13d   : > { %2314 = vmatprep.subr.mxu1 %v2535_v39  ;;  %v1275_v26 = vsel %vm386_vm4, %v1269_v18, %v1271_v22  ;;  %v1274_v34 = vsel %vm386_vm4, %v1267_v21, %v1269_v18 }
 0x13f   : > { %2248 = vmatmul.mubr.msk.f32.vlgmr.msra.gmra.mrb[0].mxu0 %vm464_vm11, %v2245_v24  ;;  %2312 = vmatmul.mubr.msk.f32.vlgmr.msra.gmra.mrb[2].mxu1 %vm464_vm11, %v446_v8 }
 0x140   : > { %2253 = vmatpush1.msk.msra.mxu0 %vm468_vm10, %v1108_v25  ;;  %v941_v27 = vpop.permute.xlu1 %940  ;;  %v775_v28 = vpop.permute.xlu0 %774  ;;  %2316 = vmatprep.mubr.msk.f32.mxu1 %vm2536_vm9, %v2535_v39 }
 0x141   : > { %2258 = vmatprep.subr.msk.mxu0 %vm468_vm10, %v1275_v26  ;;  %v778_v29 = vsel %vm365_vm1, %v773_v4, %v775_v28  ;;  %1184 = vmatprep.mubr.f32.mxu0 %v2535_v39  ;;  %v944_v30 = vsel %vm372_vm2, %v939_v6, %v941_v27 }
 0x142   : > { %2315 = vmatpush3.msk.msra.mxu1 %vm468_vm10, %v778_v29 }
 0x143   : > { %2319 = vmatprep.subr.mxu1 %v2535_v39  ;;  %2317 = vmatmul.mubr.msk.f32.vlgmr.msra.gmra.mrb[4].mxu1 %vm464_vm11, %v2239_v15 }
 0x144   : > { %v1437_v31 = vpop.permute.xlu1 %1436  ;;  %2320 = vmatpush3.msk.msra.mxu1 %vm468_vm10, %v944_v30  ;;  %v1435_v32 = vpop.permute.xlu0 %1434  ;;  %2321 = vmatprep.mubr.msk.f32.mxu1 %vm2536_vm9, %v2535_v39 }
 0x145   : > { %2324 = vmatprep.subr.mxu1 %v2535_v39  ;;  %v1441_v35 = vsel %vm393_vm5, %v1435_v32, %v1437_v31 }
 0x147   : > { %2254 = vmatmul.mubr.msk.f32.vlgmr.msra.gmra.mrb[0].mxu0 %vm464_vm11, %v2251_v33  ;;  %2322 = vmatmul.mubr.msk.f32.vlgmr.msra.gmra.mrb[6].mxu1 %vm464_vm11, %v2245_v24 }
 0x148   : > { %2259 = vmatpush1.msk.msra.mxu0 %vm468_vm10, %v1274_v34  ;;  %v1107_v41 = vpop.permute.xlu1 %1106  ;;  %v1433_v42 = vpop.permute.xlu0 %1432  ;;  %2326 = vmatprep.mubr.msk.f32.mxu1 %vm2536_vm9, %v2535_v39 }
 0x149   : > { %v1110_v43 = vsel %vm379_vm3, %v1105_v14, %v1107_v41  ;;  %2264 = vmatprep.subr.msk.mxu0 %vm468_vm10, %v1441_v35  ;;  %1350 = vmatprep.mubr.f32.mxu0 %v2535_v39  ;;  %v1440_v48 = vsel %vm393_vm5, %v1433_v42, %v1435_v32  ;;  %v1987_v42 = vld [vmem:[%s2993_s4] sm:$0x7] }
 0x14a   : > { %2325 = vmatpush3.msk.msra.mxu1 %vm468_vm10, %v1110_v43 }
 0x14b   : > { %2327 = vmatmul.mubr.msk.f32.vlgmr.msra.gmra.mrb[8].mxu1 %vm464_vm11, %v2251_v33  ;;  %2329 = vmatprep.subr.mxu1 %v2535_v39 }
 0x14c   : > { %v1601_v44 = vpop.permute.xlu1 %1600  ;;  %v1273_v45 = vpop.permute.xlu0 %1272  ;;  %2331 = vmatprep.mubr.msk.f32.mxu1 %vm2536_vm9, %v2535_v39 }
 0x14d   : > { %v1276_v47 = vsel %vm386_vm4, %v1271_v22, %v1273_v45 }
 0x14e   : > { %2330 = vmatpush3.msk.msra.mxu1 %vm468_vm10, %v1276_v47 }
 0x14f   : > { %2260 = vmatmul.mubr.msk.f32.vlgmr.msra.gmra.mrb[0].mxu0 %vm464_vm11, %v2257_v46  ;;  %2332 = vmatmul.mubr.msk.f32.vlgmr.msra.gmra.mrb[10].mxu1 %vm464_vm11, %v2257_v46  ;;  %v1992_v46 = vrot.slane %v1987_v42, %v2674_v40 }
 0x150   : > { %2265 = vmatpush1.msk.msra.mxu0 %vm468_vm10, %v1440_v48  ;;  %v1599_v49 = vpop.permute.xlu1 %1598  ;;  %v1603_v50 = vpop.permute.xlu0 %1602  ;;  %2334 = vmatprep.subr.mxu1 %v2535_v39 }
 0x151   : > { %v1607_v51 = vsel %vm400_vm6, %v1601_v44, %v1603_v50  ;;  %1516 = vmatprep.mubr.f32.mxu0 %v2535_v39  ;;  %2336 = vmatprep.mubr.msk.f32.mxu1 %vm2536_vm9, %v2535_v39  ;;  %v1606_v56 = vsel %vm400_vm6, %v1599_v49, %v1601_v44  ;;  %v1996_v49 = vrot.slane %v1987_v42, %v2664_v36 }
 0x152   : > { %2270 = vmatprep.subr.msk.mxu0 %vm468_vm10, %v1607_v51 }
 0x154   : > { %v1605_v52 = vpop.permute.xlu1 %1604  ;;  %v1439_v53 = vpop.permute.xlu0 %1438 }
 0x155   : > { %v1442_v55 = vsel %vm393_vm5, %v1437_v31, %v1439_v53  ;;  %v1608_v57 = vsel %vm400_vm6, %v1603_v50, %v1605_v52  ;;  %v2000_v50 = vrot.slane %v1987_v42, %v2667_v37 }
 0x156   : > { %2335 = vmatpush3.msk.msra.mxu1 %vm468_vm10, %v1442_v55 }
 0x157   : > { %2266 = vmatmul.mubr.msk.f32.vlgmr.msra.gmra.mrb[0].mxu0 %vm464_vm11, %v2263_v54  ;;  %2337 = vmatmul.mubr.msk.f32.vlgmr.msra.gmra.mrb[12].mxu1 %vm464_vm11, %v2263_v54 }
 0x158   : > { %2271 = vmatpush1.msk.msra.mxu0 %vm468_vm10, %v1606_v56  ;;  %2339 = vmatprep.subr.mxu1 %v2535_v39  ;;  %v1769_v58 = vpop.permute.xlu1 %1768  ;;  %v1767_v59 = vpop.permute.xlu0 %1766 }
 0x159   : > { %2340 = vmatpush3.msk.msra.mxu1 %vm468_vm10, %v1608_v57  ;;  %v1773_v61 = vsel %vm407_vm7, %v1767_v59, %v1769_v58  ;;  %2341 = vmatprep.mubr.msk.f32.mxu1 %vm2536_vm9, %v2535_v39 }
 0x15a   : > { %2276 = vmatprep.subr.msk.mxu0 %vm468_vm10, %v1773_v61  ;;  %2344 = vmatprep.subr.mxu1 %v2535_v39 }
 0x15b   : > { %2342 = vmatmul.mubr.msk.f32.vlgmr.msra.gmra.mrb[14].mxu1 %vm464_vm11, %v2269_v60  ;;  %1682 = vmatprep.mubr.f32.mxu0 %v2535_v39 }
 0x15c   : > { %v1771_v62 = vpop.permute.xlu1 %1770  ;;  %v1765_v63 = vpop.permute.xlu0 %1764  ;;  %2346 = vmatprep.mubr.msk.f32.mxu1 %vm2536_vm9, %v2535_v39 }
 0x15d   : > { %v1774_v1 = vsel %vm407_vm7, %v1769_v58, %v1771_v62  ;;  %v1772_v2 = vsel %vm407_vm7, %v1765_v63, %v1767_v59 }
 0x15e   : > { %2345 = vmatpush3.msk.msra.mxu1 %vm468_vm10, %v1774_v1 }
 0x15f   : > { %2272 = vmatmul.mubr.msk.f32.vlgmr.msra.gmra.mrb[0].mxu0 %vm464_vm11, %v2269_v60  ;;  %2347 = vmatmul.mubr.msk.f32.vlgmr.msra.gmra.mrb[16].mxu1 %vm464_vm11, %v2275_v0 }
 0x160   : > { %2277 = vmatpush1.msk.msra.mxu0 %vm468_vm10, %v1772_v2  ;;  %1848 = vmatprep.mubr.f32.mxu0 %v2535_v39  ;;  %v1957_v19 = vpop.permute.xlu1 %1956 }
 0x164   : > { %v1959_v26 = vpop.permute.xlu1 %1958 }
 0x165   : > { %v1964_v47 = vsel %vm379_vm3, %v1957_v19, %v1959_v26 }
 0x167   : > { %2278 = vmatmul.mubr.msk.f32.vlgmr.msra.gmra.mrb[0].mxu0 %vm464_vm11, %v2275_v0 }
 0x168   : > { %v1963_v33 = vpop.permute.xlu1 %1962 }
 0x16d   : > { %v1932_v24 = vpop.permute.xlu0 %1931 }
 0x171   : > { %v1961_v30 = vpop.permute.xlu0 %1960 }
 0x172   : > { %v1966_v35 = vsel %vm379_vm3, %v1961_v30, %v1963_v33  ;;  %v1965_v51 = vsel %vm379_vm3, %v1959_v26, %v1961_v30 }
 0x20e   : > { %v612_v3 = vpop.f32.mrb[0].mxu1 }
 0x20f   : > { %v2308_v4 = vpop.f32.mrb[1].mxu1 }
 0x212   : > { %v762_v5 = vpop.f32.mrb[2].mxu1 }
 0x213   : > { %v763_v6 = vadd.f32 %v762_v5, %v612_v3  ;;  %v2313_v7 = vpop.f32.mrb[3].mxu1 }
 0x216   : > { %v925_v8 = vpop.f32.mrb[4].mxu1 }
 0x217   : > { %v931_v9 = vadd.f32 %v925_v8, %v763_v6  ;;  %v2318_v10 = vpop.f32.mrb[5].mxu1 }
 0x21a   : > { %v1091_v11 = vpop.f32.mrb[6].mxu1 }
 0x21b   : > { %v1097_v12 = vadd.f32 %v1091_v11, %v931_v9  ;;  %v2323_v13 = vpop.f32.mrb[7].mxu1 }
 0x21e   : > { %v1257_v14 = vpop.f32.mrb[8].mxu1 }
 0x21f   : > { %v1263_v15 = vadd.f32 %v1257_v14, %v1097_v12  ;;  %v2328_v16 = vpop.f32.mrb[9].mxu1 }
 0x222   : > { %v1423_v17 = vpop.f32.mrb[10].mxu1 }
 0x223   : > { %v1429_v18 = vadd.f32 %v1423_v17, %v1263_v15  ;;  %v2333_v39 = vpop.f32.mrb[11].mxu1 }
 0x22a   : > { %v1589_v20 = vpop.f32.mrb[12].mxu1 }
 0x22b   : > { %v1595_v21 = vadd.f32 %v1589_v20, %v1429_v18  ;;  %v2338_v22 = vpop.f32.mrb[13].mxu1 }
 0x22e   : > { %v1755_v25 = vpop.f32.mrb[14].mxu1 }
 0x22f   : > { %v1761_v27 = vadd.f32 %v1755_v25, %v1595_v21  ;;  %v2343_v28 = vpop.f32.mrb[15].mxu1 }
 0x232   : > { %v1921_v29 = vpop.f32.mrb[16].mxu1 }
 0x233   : > { %v1927_v31 = vadd.f32 %v1921_v29, %v1761_v27  ;;  %v2348_v32 = vpop.f32.mrb[17].mxu1 }
 0x235   : > { %v1936_v34 = vadd.f32 %v1932_v24, %v1927_v31 }
 0x237   : > { %v1972_v41 = vmul.f32 %v1966_v35, %v1936_v34 }
 0x239   : > { %1975 = vst [vmem:[%s2892_s22 + $0x10] sm:$0xff] %v1972_v41  ;;  %v2006_v56 = vmul.f32 %v2000_v50, %v1972_v41 }
 0x23a   : > { %v1850_v43 = vpop.f32.mrb[0].mxu0 }
 0x23b   : > { %v1934_v44 = vadd.f32 %v1932_v24, %v1850_v43  ;;  %v1852_v45 = vpop.f32.mrb[1].mxu0  ;;  %v2015_v36 = vmul.f32 %v2006_v56, %v1972_v41 }
 0x23c   : > { %v1935_v48 = vadd.f32 %v1932_v24, %v1852_v45 }
 0x23d   : > { %v1970_v52 = vmul.f32 %v1964_v47, %v1934_v44 }
 0x23e   : > { %v1971_v53 = vmul.f32 %v1965_v51, %v1935_v48 }
 0x23f   : > { %1973 = vst [vmem:[%s2892_s22] sm:$0xff] %v1970_v52  ;;  %v2004_v54 = vmul.f32 %v1992_v46, %v1970_v52 }
 0x240   : > { %1974 = vst [vmem:[%s2892_s22 + $0x8] sm:$0xff] %v1971_v53  ;;  %v2005_v55 = vmul.f32 %v1996_v49, %v1971_v53 }
 0x241   : > { %v2013_v40 = vmul.f32 %v2004_v54, %v1970_v52 }
 0x242   : > { %v2007_v57 = vadd.f32 %v2005_v55, %v2004_v54  ;;  %v2014_v58 = vmul.f32 %v2005_v55, %v1971_v53 }
 0x244   : > { %v2008_v59 = vadd.f32 %v2007_v57, %v2006_v56  ;;  %v2016_v60 = vadd.f32 %v2014_v58, %v2013_v40 }
 0x246   : > { %2009 = vadd.xlane.f32.xlu0 %v2008_v59  ;;  %v2017_v37 = vadd.f32 %v2016_v60, %v2015_v36 }
 0x248   : > { %2018 = vadd.xlane.f32.xlu1 %v2017_v37 }
 0x25c   : > { %1977 = vrot.lane.b32.xlu0 %v2669_v38, %s2529_s25 }
 0x25d   : > { %2443 = shalt.err (!%p2440_p3)
}
 0x25e   : > { %s2444_s25 = scalar_lea.hbm %s2912_s18, 384  ;;  %s2448_s12 = scalar_lea.hbm %s2994_s5, 768 }
 0x25f   : > { %p2445_p4 = scmp.ne.s32.totalorder %s2912_s18, %s2444_s25  ;;  %p2449_p9 = scmp.lt.u32.totalorder %s2912_s18, %s2994_s5 }
 0x260   : > { %p2450_p10 = scmp.lt.u32.totalorder %s2448_s12, %s2444_s25  ;;  %p2452_p12 = scmp.lt.u32.totalorder %s2444_s25, %s2912_s18 }
 0x261   : > { %p2446_p7 = pnand %p2445_p4, %p2622_p5 }
 0x262   : > { %p2451_p11 = por %p2450_p10, %p2449_p9 }
 0x263   : > { %p2447_p8 = pneg %p2446_p7 }
 0x264   : > { %p2453_p13 = por %p2452_p12, %p2451_p11 }
 0x266   : > { %p2454_p0 = pnand %p2453_p13, %p2447_p8 }
 0x268   : > { %2457 = shalt.err (!%p2454_p0)
}
 0x269   : > { %2370 = dma.vmem_to_hbm [thread:$0]  (%p2622_p5), %s2050_s10, 384, %s2912_s18, %s2022_s19   ;;  %vm2011_vm12 = vcmask 7168   ;;  %vm1984_vm13 = vcmp.lt.s32.totalorder %v416_v23, 384 }
 0x26a   : > { %s2226_s0 = sshll.u32 %s2634_s17, 3  ;;  %s2366_s21 = smul.u32 3, %s2888_s20 }
 0x26b   : > { %s347_s26 = scalar_lea.vmem %s2996_s7, %s2226_s0  ;;  %s351_s13 = scalar_lea.vmem %s2997_s8, %s2226_s0 }
 0x26c   : > { %s2369_s23 = smul.u32 48, %s2605_s9  ;;  %s322_s1 = scalar_lea.vmem [#allocation4], %s2366_s21 }
 0x26d   : > { %s2063_s10 = sshll.u32 %s322_s1, 4  ;;  %s2027_s9 = scalar_lea.sflag [#allocation5], %s2888_s20  ;;  %s2947_s10 = int_to_ptr.vmem [resolvable:$true] %s2063_s10 }
 0x26e   : > { %s2945_s19 = scalar_lea.hbm %s2995_s6, %s2369_s23  ;;  %s2458_s0 = scalar_lea.vmem %s2947_s10, 48 }
 0x26f   : > { %p2459_p1 = scmp.ne.s32.totalorder %s2947_s10, %s2458_s0  ;;  %s2538_s21 = smov [#allocation4]  }
 0x270   : > { %s2462_s24 = sshll.u32 %s2538_s21, 4  ;;  %s2463_s24 = int_to_ptr.vmem [resolvable:$false] %s2462_s24 }
 0x271   : > { %p2460_p2 = pnand %p2459_p1, %p2622_p5  ;;  %s2464_s22 = scalar_lea.vmem %s2463_s24, 96 }
 0x272   : > { %p2465_p4 = scmp.lt.s32.totalorder %s2947_s10, %s2463_s24  ;;  %p2466_p7 = scmp.lt.s32.totalorder %s2464_s22, %s2458_s0 }
 0x273   : > { %p2461_p3 = pneg %p2460_p2 }
 0x274   : > { %p2467_p8 = por %p2466_p7, %p2465_p4 }
 0x276   : > { %p2468_p9 = pnand %p2467_p8, %p2461_p3 }
 0x2d3   : > { %v2010_v38 = vpop.xlane.xlu0 %2009 }
 0x2d4   : > { %2012 = vst.msk [vmem:[%s347_s26] sm:$0xff] %vm2011_vm12, %v2010_v38 }
 0x2d5   : > { %v2019_v61 = vpop.xlane.xlu1 %2018 }
 0x2d6   : > { %2020 = vst.msk [vmem:[%s351_s13] sm:$0xff] %vm2011_vm12, %v2019_v61 }
 0x2d7   : > { %v1978_v62 = vpop.permute.xlu0 %1977 }
 0x2d8   : > { %v1979_v63 = vrot.slane %v1978_v62, 1 }
 0x2da   : > { %v1980_v0 = vsel %vm379_vm3, %v1978_v62, %v1979_v63 }
 0x2db   : > { %1986 = vst.msk [vmem:[%s322_s1] sm:$0x7] %vm1984_vm13, %v1980_v0 }
 0x2dc   : > { %2471 = shalt.err (!%p2468_p9)
}
 0x2dd   : > { %s2472_s1 = scalar_lea.hbm %s2945_s19, 48  ;;  %s2476_s25 = scalar_lea.hbm %s2995_s6, 96 }
 0x2de   : > { %p2473_p10 = scmp.ne.s32.totalorder %s2945_s19, %s2472_s1  ;;  %p2477_p13 = scmp.lt.u32.totalorder %s2945_s19, %s2995_s6 }
 0x2df   : > { %p2478_p0 = scmp.lt.u32.totalorder %s2476_s25, %s2472_s1  ;;  %p2480_p2 = scmp.lt.u32.totalorder %s2472_s1, %s2945_s19 }
 0x2e0   : > { %p2474_p11 = pnand %p2473_p10, %p2622_p5 }
 0x2e1   : > { %p2479_p1 = por %p2478_p0, %p2477_p13 }
 0x2e2   : > { %p2475_p12 = pneg %p2474_p11 }
 0x2e3   : > { %p2481_p3 = por %p2480_p2, %p2479_p1 }
 0x2e5   : > { %p2482_p4 = pnand %p2481_p3, %p2475_p12 }
 0x2e7   : > { %2485 = shalt.err (!%p2482_p4)
}
 0x2e8   : > { %2371 = dma.vmem_to_hbm [thread:$0]  (%p2622_p5), %s2947_s10, 48, %s2945_s19, %s2027_s9  }
 0x2e9 PF: > { %p2381_p7 = scmp.ge.s32.totalorder %s2524_s30, 2  ;;  %s2081_s23 = sand.u32 1, %s2512_s27  }
 0x2ea   : > { %s2082_s17 = scalar_lea.sflag [#allocation3], %s2081_s23 }
 0x2eb   : > { %p2375_p8 = pnand %p2381_p7, %p2626_p6 }
 0x2ed   : > { %2503 = dma.done.wait (!%p2375_p8), %s2082_s17, 384  }
 0x2ee   : > { %2505 = vsyncadd (!%p2375_p8), %s2082_s17, 4294966912  ;;  %s2091_s18 = scalar_lea.sflag [#allocation5], %s2081_s23 }
 0x2ef   : > { %2507 = dma.done.wait (!%p2375_p8), %s2091_s18, 48  }
 0x2f0   : > { %2509 = vsyncadd (!%p2375_p8), %s2091_s18, 4294967248  ;;  %p22_p5 = scmp.ge.s32.totalorder %s2609_s11, 4   ;;  %s3004_s27 = smov %s2516_s28 }
 0x2f1   : > { %s3005_s28 = smov %s2520_s29  ;;  %s3006_s29 = smov %s2620_s14 }
 0x2f2   : > { %s3007_s30 = smov %s2609_s11  ;;  %24 = sbr.rel (!%p22_p5) target bundleno = 8 (0x8), region = 127 }
 0x2f9   :  { %2110 = vsyncpa [#allocation3], 1 }
 0x2fa   :  { %2112 = vsyncpa [#allocation3 + $0x1], 1 }
 0x2fb   :  { %2113 = vsyncpa [#allocation5], 1 }
 0x2fc   :  { %2115 = vsyncpa [#allocation5 + $0x1], 1 }

</bundles_post_ra>
